<compile_context>
chip_gen: v7x
topology: tpu7x:2x2x1
jax: 0.10.0
libtpu: 0.0.40
codegen_flags: <defaults>
</compile_context>

<pallas_src>
import jax
import jax.numpy as jnp
from jax import lax
from jax.experimental import pallas as pl
from jax.experimental.pallas import tpu as pltpu


# ----------------------------- small helpers --------------------------------

def _round_up(n, m):
    return ((n + m - 1) // m) * m


def _largest_divisor(n, cap, mult=1):
    """Largest d dividing n with d <= cap and d % mult == 0 (fallback: n)."""
    best = None
    for d in range(1, min(n, cap) + 1):
        if n % d == 0 and d % mult == 0:
            best = d
    return best if best is not None else n


# ------------------- hoisted layer-1 input projection ------------------------

def _gate_proj_kernel(x_ref, w_ref, b_ref, o_ref):
    o_ref[...] = (
        jnp.dot(x_ref[...], w_ref[...], preferred_element_type=jnp.float32)
        + b_ref[...]
    ).astype(o_ref.dtype)


def _input_projection(x_flat, w_t, b):
    """(R, D) @ (D, 4hp) + b -> (R, 4hp) bf16, lane-dense tiled matmul."""
    R, D = x_flat.shape
    G = w_t.shape[1]
    rb = 512 if R >= 512 else _round_up(R, 16)       # bf16 rows want multiples of 16
    Rp = _round_up(R, rb)                            # pad rows instead of divisor games
    if Rp != R:
        x_flat = jnp.pad(x_flat, ((0, Rp - R), (0, 0)))
    out = pl.pallas_call(
        _gate_proj_kernel,
        out_shape=jax.ShapeDtypeStruct((Rp, G), jnp.bfloat16),
        grid_spec=pltpu.PrefetchScalarGridSpec(
            num_scalar_prefetch=0,
            grid=(Rp // rb,),
            in_specs=[
                pl.BlockSpec((rb, D), lambda r: (r, 0)),
                pl.BlockSpec((D, G), lambda r: (0, 0)),
                pl.BlockSpec((1, G), lambda r: (0, 0)),
            ],
            out_specs=pl.BlockSpec((rb, G), lambda r: (r, 0)),
        ),
        compiler_params=pltpu.CompilerParams(dimension_semantics=("parallel",)),
    )(x_flat, w_t, b)
    return out[:R] if Rp != R else out


# ------------------------ fused, skewed 2-layer recurrence --------------------

def _fused_lstm2_kernel(g1_ref, wf_ref, b2_ref, out_ref, h_scr, c1_scr, c2_scr):
    """Grid = (batch_blocks, time_blocks); time axis (minor) is sequential.

    Skewed schedule: global iteration j computes layer-1 step j and layer-2 step j-1
    with ONE fused matmul  [h1(j-1) | h2(j-2)] @ [[Whh1^T, Wih2^T], [0, Whh2^T]].
    The phantom layer-2 step (j == 0) is masked to keep the zero initial state; the
    final layer-2 step (T-1) is drained after the loop of the last time block.
    """
    t = pl.program_id(1)
    n_t = pl.num_programs(1)
    tc = g1_ref.shape[0]          # timesteps per grid step
    bc = out_ref.shape[0]         # batch rows per block (multiple of 8)
    hp = out_ref.shape[-1]        # padded hidden dim (multiple of 128)

    @pl.when(t == 0)
    def _():
        h_scr[...] = jnp.zeros_like(h_scr)
        c1_scr[...] = jnp.zeros_like(c1_scr)
        c2_scr[...] = jnp.zeros_like(c2_scr)

    wf = wf_ref[...]                                        # (2hp, 8hp) bf16, VMEM-resident
    b2b = jnp.broadcast_to(b2_ref[...], (bc, 4 * hp))       # hoisted out of the time loop

    def cell(gates, c_old):
        # gate order (i, f, o, g): one contiguous sigmoid slab + one tanh slab
        sig = jax.nn.sigmoid(gates[:, : 3 * hp])
        i_g = sig[:, 0 * hp:1 * hp]
        f_g = sig[:, 1 * hp:2 * hp]
        o_g = sig[:, 2 * hp:]
        g_g = jnp.tanh(gates[:, 3 * hp:])
        c_new = f_g * c_old + i_g * g_g
        h_new = o_g * jnp.tanh(c_new)
        return h_new, c_new

    def step(k, carry):
        lhs, c1, c2 = carry      # lhs = [h1(j-1) | h2(j-2)] bf16 ; c1=c1(j-1) ; c2=c2(j-2)
        res = jnp.dot(lhs, wf, preferred_element_type=jnp.float32)      # (bc, 8hp)
        gates1 = g1_ref[k].astype(jnp.float32) + res[:, : 4 * hp]       # layer-1 step j
        gates2 = res[:, 4 * hp:] + b2b                                   # layer-2 step j-1
        h1_new, c1_new = cell(gates1, c1)
        h2_new, c2_new = cell(gates2, c2)
        # Mask the phantom layer-2 step at global iteration j == 0 (t == 0 and k == 0):
        keep = ((t + k) > 0).astype(jnp.float32)
        h2_new = h2_new * keep
        c2_new = c2_new * keep
        lhs_next = jnp.concatenate([h1_new, h2_new], axis=-1).astype(jnp.bfloat16)
        return lhs_next, c1_new, c2_new

    carry0 = (h_scr[...], c1_scr[...], c2_scr[...])
    lhs_f, c1_f, c2_f = lax.fori_loop(0, tc, step, carry0, unroll=True)

    # persist state across time blocks (scratch touched once per block, not per step)
    h_scr[...] = lhs_f
    c1_scr[...] = c1_f
    c2_scr[...] = c2_f

    @pl.when(t == n_t - 1)
    def _():
        # drain: layer-2 step T-1 from lhs_f = [h1(T-1) | h2(T-2)], c2_f = c2(T-2)
        res = jnp.dot(lhs_f, wf, preferred_element_type=jnp.float32)
        gates2 = res[:, 4 * hp:] + b2b
        h2_last, _ = cell(gates2, c2_f)
        out_ref[...] = h2_last.astype(out_ref.dtype)


# ------------------------------ wrapper --------------------------------------

def lstm_encoder_forward(x_btd, kparams, *, time_block=None, batch_block=None):
    """x_btd: (B, T, D) f32.  Returns hn[-1]: (B, H) f32."""
    B, T, D = x_btd.shape
    H = kparams["hidden_dim"]
    hp = kparams["hp"]
    Bp = _round_up(B, 8)

    # pad batch to sublane multiple, go time-major
    x = jnp.pad(x_btd.astype(jnp.float32), ((0, Bp - B), (0, 0), (0, 0)))
    x_tbd = jnp.transpose(x, (1, 0, 2))                       # (T, Bp, D)

    # hoisted layer-1 input projection for the whole sequence (bf16 output stream)
    g1 = _input_projection(
        x_tbd.reshape(T * Bp, D).astype(jnp.bfloat16),
        kparams["wih1_t"], kparams["b1"],
    ).reshape(T, Bp, 4 * hp)

    tc = time_block if time_block is not None else _largest_divisor(T, cap=16)
    assert T % tc == 0
    if batch_block is not None:
        bc = batch_block
    elif Bp >= 256 and Bp % 16 == 0:
        bc = Bp // 2        # engage both TensorCores on v7x; keeps bc >= 128
    else:
        bc = Bp             # single TC (v5e/v6e) or small batch: one batch block
    assert Bp % bc == 0 and bc % 8 == 0
    grid = (Bp // bc, T // tc)

    # TODO(synk): pipeline_mode=pl.Buffered(1) on the weight/bias specs would halve their
    # dead double-buffer VMEM on v7x; omitted to stay on the most conservative API surface.
    hn = pl.pallas_call(
        _fused_lstm2_kernel,
        out_shape=jax.ShapeDtypeStruct((Bp, hp), jnp.float32),
        grid_spec=pltpu.PrefetchScalarGridSpec(
            num_scalar_prefetch=0,
            grid=grid,
            in_specs=[
                pl.BlockSpec((tc, bc, 4 * hp), lambda b, t: (t, b, 0)),  # g1 (bf16)
                pl.BlockSpec((2 * hp, 8 * hp), lambda b, t: (0, 0)),     # fused weights
                pl.BlockSpec((1, 4 * hp), lambda b, t: (0, 0)),          # bias2
            ],
            out_specs=pl.BlockSpec((bc, hp), lambda b, t: (b, 0)),
            scratch_shapes=[
                pltpu.VMEM((bc, 2 * hp), jnp.bfloat16),   # [h1 | h2] carry (MXU feed)
                pltpu.VMEM((bc, hp), jnp.float32),        # c1
                pltpu.VMEM((bc, hp), jnp.float32),        # c2
            ],
        ),
        compiler_params=pltpu.CompilerParams(
            dimension_semantics=("parallel", "arbitrary"),
            vmem_limit_bytes=48 * 1024 * 1024),           # budget for v7x's 64 MiB VMEM
    )(g1, kparams["wf"], kparams["b2"])

    return hn[:B, :H]


# --------------------------- parameter handling ------------------------------

def init_raw_lstm_params(key, input_dim, hidden_dim, num_layers=2):
    """nn.LSTM-shaped params, gate order (i,f,g,o), U(-k, k), k=1/sqrt(H)."""
    params = []
    k = 1.0 / float(hidden_dim) ** 0.5
    d_in = input_dim
    for _ in range(num_layers):
        key, k1, k2, k3, k4 = jax.random.split(key, 5)
        w_ih = jax.random.uniform(k1, (4 * hidden_dim, d_in), jnp.float32, -k, k)
        w_hh = jax.random.uniform(k2, (4 * hidden_dim, hidden_dim), jnp.float32, -k, k)
        b_ih = jax.random.uniform(k3, (4 * hidden_dim,), jnp.float32, -k, k)
        b_hh = jax.random.uniform(k4, (4 * hidden_dim,), jnp.float32, -k, k)
        params.append((w_ih, w_hh, b_ih, b_hh))
        d_in = hidden_dim
    return params


def _reorder_pad_gate_cols(m, H, hp):
    """m: (K, 4H) in PyTorch order (i,f,g,o) -> (K, 4hp) in order (i,f,o,g),
    each gate block zero-padded from H to hp columns."""
    i, f, g, o = (m[:, 0 * H:1 * H], m[:, 1 * H:2 * H],
                  m[:, 2 * H:3 * H], m[:, 3 * H:4 * H])
    pad = lambda a: jnp.pad(a, ((0, 0), (0, hp - H)))
    return jnp.concatenate([pad(i), pad(f), pad(o), pad(g)], axis=1)


def prepare_kernel_params(raw_params, hidden_dim):
    """Pre-transpose, gate-reorder, pad, fuse and bf16-cast weights for the kernels."""
    assert len(raw_params) == 2  # TODO(synk): generalize fused kernel to num_layers != 2
    H = hidden_dim
    hp = _round_up(H, 128)
    (wih1, whh1, bih1, bhh1), (wih2, whh2, bih2, bhh2) = raw_params

    pad_rows = lambda m: jnp.pad(m, ((0, hp - H), (0, 0)))

    wih1_t = _reorder_pad_gate_cols(wih1.T, H, hp)                  # (D, 4hp)
    whh1_t = pad_rows(_reorder_pad_gate_cols(whh1.T, H, hp))        # (hp, 4hp)
    b1 = _reorder_pad_gate_cols((bih1 + bhh1)[None, :], H, hp)      # (1, 4hp)

    wih2_t = pad_rows(_reorder_pad_gate_cols(wih2.T, H, hp))        # (hp, 4hp)
    whh2_t = pad_rows(_reorder_pad_gate_cols(whh2.T, H, hp))        # (hp, 4hp)
    b2 = _reorder_pad_gate_cols((bih2 + bhh2)[None, :], H, hp)      # (1, 4hp)

    # fused block weight for the skewed per-step matmul:
    #   [h1 | h2] @ [[Whh1^T, Wih2^T], [0, Whh2^T]]  =  [h1@Whh1^T | h1@Wih2^T + h2@Whh2^T]
    top = jnp.concatenate([whh1_t, wih2_t], axis=1)                 # (hp, 8hp)
    bot = jnp.concatenate([jnp.zeros_like(whh1_t), whh2_t], axis=1) # (hp, 8hp)
    wf = jnp.concatenate([top, bot], axis=0)                        # (2hp, 8hp)

    return dict(
        hidden_dim=H, hp=hp,
        wih1_t=wih1_t.astype(jnp.bfloat16),
        wf=wf.astype(jnp.bfloat16),
        b1=b1.astype(jnp.float32),
        b2=b2.astype(jnp.float32),
    )


# ------------------------------ reference ------------------------------------

def lstm_encoder_reference(x_btd, raw_params):
    """Pure-JAX f32 mirror of nn.LSTM(batch_first=True) returning hn[-1]."""
    h_seq = x_btd
    h = None
    for (w_ih, w_hh, b_ih, b_hh) in raw_params:
        B, T, _ = h_seq.shape
        H = w_hh.shape[1]
        h = jnp.zeros((B, H), jnp.float32)
        c = jnp.zeros((B, H), jnp.float32)
        outs = []
        for t in range(T):
            gates = h_seq[:, t, :] @ w_ih.T + h @ w_hh.T + b_ih + b_hh
            i = jax.nn.sigmoid(gates[:, 0 * H:1 * H])
            f = jax.nn.sigmoid(gates[:, 1 * H:2 * H])
            g = jnp.tanh(gates[:, 2 * H:3 * H])
            o = jax.nn.sigmoid(gates[:, 3 * H:4 * H])
            c = f * c + i * g
            h = o * jnp.tanh(c)
            outs.append(h)
        h_seq = jnp.stack(outs, axis=1)
    return h


# -------------------------------- demo ---------------------------------------

if __name__ == "__main__":
    B, T, D, H, L = 2, 8, 16, 64, 2
    key = jax.random.PRNGKey(0)
    key, xk = jax.random.split(key)
    x = jax.random.normal(xk, (B, T, D), jnp.float32)

    raw_params = init_raw_lstm_params(key, input_dim=D, hidden_dim=H, num_layers=L)
    kparams = prepare_kernel_params(raw_params, hidden_dim=H)

    # time_block=4 exercises the cross-time-block state carry and the drain step
    hn = jax.block_until_ready(
        lstm_encoder_forward(x, kparams, time_block=4))
    assert hn.shape == (B, H)

    ref = lstm_encoder_reference(x, raw_params)
    max_err = float(jnp.max(jnp.abs(hn - ref)))
    assert max_err < 5e-2, f"mismatch vs f32 reference: max abs err {max_err}"

    print("KERNEL_OK")
</pallas_src>

<mosaic_0001>
module attributes {stable_mosaic.version = 11 : i64} {
  func.func @_gate_proj_kernel(%arg0: i32, %arg1: memref<64x16xbf16, #tpu.memory_space<vmem>>, %arg2: memref<16x512xbf16, #tpu.memory_space<vmem>>, %arg3: memref<1x512xf32, #tpu.memory_space<vmem>>, %arg4: memref<64x512xbf16, #tpu.memory_space<vmem>>) attributes {dimension_semantics = [#tpu.dimension_semantics<parallel>], iteration_bounds = array<i64: 1>, scalar_prefetch = 0 : i64, scratch_operands = 0 : i64, tpu.core_type = #tpu.core_type<tc>, window_params = [{transform_indices = @transform_0, window_bounds = array<i64: 64, 16>}, {pipeline_mode = #tpu.pipeline_mode<synchronous>, transform_indices = @transform_1, window_bounds = array<i64: 16, 512>}, {pipeline_mode = #tpu.pipeline_mode<synchronous>, transform_indices = @transform_2, window_bounds = array<i64: 1, 512>}, {transform_indices = @transform_3, window_bounds = array<i64: 64, 512>}]} {
    %c0 = arith.constant 0 : index
    %c0_0 = arith.constant 0 : index
    %0 = vector.load %arg1[%c0, %c0_0] : memref<64x16xbf16, #tpu.memory_space<vmem>>, vector<64x16xbf16>
    %c0_1 = arith.constant 0 : index
    %c0_2 = arith.constant 0 : index
    %1 = vector.load %arg2[%c0_1, %c0_2] : memref<16x512xbf16, #tpu.memory_space<vmem>>, vector<16x512xbf16>
    %cst = arith.constant dense<0.000000e+00> : vector<64x512xf32>
    %2 = tpu.matmul %0, %1, %cst {dimension_numbers = #tpu.dot_dimension_numbers<[1], [0], [0], [1], [0, 0, 1, 1], [], []>} : vector<64x16xbf16>, vector<16x512xbf16>, vector<64x512xf32> -> vector<64x512xf32>
    %c0_3 = arith.constant 0 : index
    %c0_4 = arith.constant 0 : index
    %3 = vector.load %arg3[%c0_3, %c0_4] : memref<1x512xf32, #tpu.memory_space<vmem>>, vector<1x512xf32>
    %4 = vector.broadcast %3 : vector<1x512xf32> to vector<64x512xf32>
    %5 = arith.addf %2, %4 : vector<64x512xf32>
    %6 = arith.truncf %5 : vector<64x512xf32> to vector<64x512xbf16>
    %c0_5 = arith.constant 0 : index
    %c0_6 = arith.constant 0 : index
    %7 = vector.load %arg4[%c0_5, %c0_6] : memref<64x512xbf16, #tpu.memory_space<vmem>>, vector<64x512xbf16>
    tpu.vector_store %arg4[%c0_5, %c0_6], %6 {strides = array<i32>} : memref<64x512xbf16, #tpu.memory_space<vmem>>, vector<64x512xbf16>,
    return
  }
  func.func @transform_0(%arg0: i32) -> (i32, i32) {
    %c0_i32 = arith.constant 0 : i32
    %c0_i32_0 = arith.constant 0 : i32
    return %arg0, %c0_i32 : i32, i32
  }
  func.func @transform_1(%arg0: i32) -> (i32, i32) {
    %c0_i32 = arith.constant 0 : i32
    %c0_i32_0 = arith.constant 0 : i32
    %c0_i32_1 = arith.constant 0 : i32
    return %c0_i32, %c0_i32_0 : i32, i32
  }
  func.func @transform_2(%arg0: i32) -> (i32, i32) {
    %c0_i32 = arith.constant 0 : i32
    %c0_i32_0 = arith.constant 0 : i32
    %c0_i32_1 = arith.constant 0 : i32
    return %c0_i32, %c0_i32_0 : i32, i32
  }
  func.func @transform_3(%arg0: i32) -> (i32, i32) {
    %c0_i32 = arith.constant 0 : i32
    %c0_i32_0 = arith.constant 0 : i32
    return %arg0, %c0_i32 : i32, i32
  }
}

</mosaic_0001>

<bundles_post_ra>
// kernel: tpu_custom_call.1
= control target key start
LH: loop header
LB: loop body
LE: loop exit
PB: predicated region body
PF: predicated region fallthrough
CT: control target
= control target key end

     0   :  { %v463_v2 = vmov 0   ;;  %vm90_vm0 = vcmask 130048   ;;  %s574_s0 = inlined_call_operand.vmem [shape: bf16[64,16], index: 0, kind: input, shape index: {}]   ;;  %s575_s1 = inlined_call_operand.vmem [shape: bf16[16,512], index: 1, kind: input, shape index: {}]   ;;  %s576_s2 = inlined_call_operand.vmem [shape: f32[1,512], index: 2, kind: input, shape index: {}]   ;;  %s577_s3 = inlined_call_operand.hbm [shape: bf16[64,512], index: 3, kind: output, shape index: {}]  }
   0x1   :  { %v429_v0 = vld [vmem:[%s575_s1 + $0x4] ss:$16 sps:$4 sm:$0xff]   ;;  %v431_v1 = vld [vmem:[%s575_s1 + $0xc] ss:$16 sps:$4 sm:$0xff]   ;;  %135 = vmatprep.mubr.bf16.mxu0 %v463_v2  ;;  %208 = vmatprep.mubr.bf16.mxu1 %v463_v2  ;;  %v433_v3 = vld [vmem:[%s575_s1] ss:$16 sps:$4 sm:$0xff]  }
   0x2   :  { %103 = vmatprep.subr.bf16.mxu0 %v429_v0  ;;  %v434_v4 = vld [vmem:[%s575_s1 + $0x8] ss:$16 sps:$4 sm:$0xff]   ;;  %176 = vmatprep.subr.bf16.mxu1 %v431_v1  ;;  %v435_v5 = vld [vmem:[%s574_s0] sm:$0xff]  }
   0x3   :  { %104 = vmatpush1.bf16.msra.mxu0 %v433_v3  ;;  %177 = vmatpush1.bf16.msra.mxu1 %v434_v4 }
   0x6   :  { %385 = vmatmul.mubr.msk.bf16.vlgmr.msra.gmra.mrb[0].mxu0 %vm90_vm0, %v435_v5  ;;  %389 = vmatmul.mubr.msk.bf16.vlgmr.msra.gmra.mrb[0].mxu1 %vm90_vm0, %v435_v5 }
   0x7   :  { %8 = vsyncpa [#allocation3], 0  ;;  %145 = vmatprep.mubr.bf16.mxu0 %v463_v2  ;;  %218 = vmatprep.mubr.bf16.mxu1 %v463_v2  ;;  %v436_v6 = vld [vmem:[%s574_s0 + $0x8] sm:$0xff]   ;;  %v437_v7 = vld [vmem:[%s574_s0 + $0x10] sm:$0xff]   ;;  %v30_v9 = vlaneseq }
   0x8   :  { %v438_v8 = vld [vmem:[%s574_s0 + $0x18] sm:$0xff]   ;;  %v28_v13 = vld [vmem:[%s576_s2] sm:$0xf]  ;;  %s464_s0 = smov [#allocation2]  }
   0x9   :  { %v31_v10 = vshrl.u32 %v30_v9, 7  ;;  %s366_s2 = sshll.u32 %s464_s0, 4  ;;  %s367_s2 = int_to_ptr.vmem [resolvable:$true] %s366_s2 }
   0xa   :  { %s439_s29 = scalar_lea.vmem %s367_s2, 2048  ;;  %p444_p1 = scmp.lt.s32.totalorder %s367_s2, %s367_s2 }
   0xb   :  { %v32_v11 = vsub.s32 0, %v31_v10  ;;  %v40_v12 = vsub.s32 2, %v31_v10  ;;  %v36_v14 = vsub.s32 1, %v31_v10  ;;  %v44_v15 = vsub.s32 3, %v31_v10  ;;  %p440_p0 = scmp.ne.s32.totalorder %s367_s2, %s439_s29  ;;  %p445_p2 = scmp.lt.s32.totalorder %s439_s29, %s439_s29 }
   0xd   :  { %v522_v16 = vrot.slane %v28_v13, %v32_v11  ;;  %v524_v17 = vrot.slane %v28_v13, %v40_v12  ;;  %v526_v18 = vrot.slane %v28_v13, %v36_v14  ;;  %v528_v19 = vrot.slane %v28_v13, %v44_v15  ;;  %p446_p3 = por %p445_p2, %p444_p1 }
   0xe   :  { %386 = vmatmul.mubr.msk.bf16.gmra.mrb[4].mxu0 %vm90_vm0, %v436_v6  ;;  %390 = vmatmul.mubr.msk.bf16.gmra.mrb[4].mxu1 %vm90_vm0, %v436_v6 }
   0xf   :  { %155 = vmatprep.mubr.bf16.mxu0 %v463_v2  ;;  %228 = vmatprep.mubr.bf16.mxu1 %v463_v2  ;;  %p447_p4 = pnand %p446_p3, %p440_p0 }
  0x16   :  { %387 = vmatmul.mubr.msk.bf16.gmra.mrb[8].mxu0 %vm90_vm0, %v437_v7  ;;  %391 = vmatmul.mubr.msk.bf16.gmra.mrb[8].mxu1 %vm90_vm0, %v437_v7 }
  0x17   :  { %165 = vmatprep.mubr.bf16.mxu0 %v463_v2  ;;  %238 = vmatprep.mubr.bf16.mxu1 %v463_v2 }
  0x1e   :  { %388 = vmatmul.mubr.msk.bf16.gmra.mrb[12].mxu0 %vm90_vm0, %v438_v8  ;;  %392 = vmatmul.mubr.msk.bf16.gmra.mrb[12].mxu1 %vm90_vm0, %v438_v8 }
  0xd9   :  { %v137_v20 = vpop.f32.mrb[0].mxu0  ;;  %v210_v21 = vpop.f32.mrb[0].mxu1 }
  0xda   :  { %v138_v22 = vadd.f32 %v137_v20, %v522_v16  ;;  %v211_v23 = vadd.f32 %v210_v21, %v524_v17  ;;  %v139_v24 = vpop.f32.mrb[1].mxu0  ;;  %v212_v25 = vpop.f32.mrb[1].mxu1 }
  0xdb   :  { %v140_v26 = vadd.f32 %v139_v24, %v526_v18  ;;  %v213_v27 = vadd.f32 %v212_v25, %v528_v19  ;;  %v141_v28 = vpop.f32.mrb[2].mxu0  ;;  %v214_v29 = vpop.f32.mrb[2].mxu1 }
  0xdc   :  { %v142_v30 = vadd.f32 %v141_v28, %v522_v16  ;;  %v215_v31 = vadd.f32 %v214_v29, %v524_v17  ;;  %v143_v32 = vpop.f32.mrb[3].mxu0  ;;  %v216_v33 = vpop.f32.mrb[3].mxu1 }
  0xdd   :  { %v409_v34 = vpack.c.bf16 %v140_v26, %v138_v22  ;;  %v410_v35 = vpack.c.bf16 %v213_v27, %v211_v23  ;;  %v144_v36 = vadd.f32 %v143_v32, %v526_v18  ;;  %v217_v37 = vadd.f32 %v216_v33, %v528_v19 }
  0xdf   :  { %345 = vst [vmem:[#allocation2] sm:$0xff] %v409_v34  ;;  %346 = vst [vmem:[#allocation2 + $0x8] sm:$0xff] %v410_v35  ;;  %v411_v38 = vpack.c.bf16 %v144_v36, %v142_v30  ;;  %v412_v39 = vpack.c.bf16 %v217_v37, %v215_v31 }
  0xe1   :  { %347 = vst [vmem:[#allocation2 + $0x10] sm:$0xff] %v411_v38  ;;  %348 = vst [vmem:[#allocation2 + $0x18] sm:$0xff] %v412_v39  ;;  %v147_v40 = vpop.f32.mrb[4].mxu0  ;;  %v220_v41 = vpop.f32.mrb[4].mxu1 }
  0xe2   :  { %v148_v42 = vadd.f32 %v147_v40, %v522_v16  ;;  %v221_v43 = vadd.f32 %v220_v41, %v524_v17  ;;  %v149_v44 = vpop.f32.mrb[5].mxu0  ;;  %v222_v45 = vpop.f32.mrb[5].mxu1 }
  0xe3   :  { %v150_v46 = vadd.f32 %v149_v44, %v526_v18  ;;  %v223_v47 = vadd.f32 %v222_v45, %v528_v19  ;;  %v151_v48 = vpop.f32.mrb[6].mxu0  ;;  %v224_v49 = vpop.f32.mrb[6].mxu1 }
  0xe4   :  { %v152_v50 = vadd.f32 %v151_v48, %v522_v16  ;;  %v225_v51 = vadd.f32 %v224_v49, %v524_v17  ;;  %v153_v52 = vpop.f32.mrb[7].mxu0  ;;  %v226_v53 = vpop.f32.mrb[7].mxu1 }
  0xe5   :  { %v413_v54 = vpack.c.bf16 %v150_v46, %v148_v42  ;;  %v414_v55 = vpack.c.bf16 %v223_v47, %v221_v43  ;;  %v154_v56 = vadd.f32 %v153_v52, %v526_v18  ;;  %v227_v57 = vadd.f32 %v226_v53, %v528_v19 }
  0xe7   :  { %349 = vst [vmem:[#allocation2 + $0x20] sm:$0xff] %v413_v54  ;;  %350 = vst [vmem:[#allocation2 + $0x28] sm:$0xff] %v414_v55  ;;  %v415_v58 = vpack.c.bf16 %v154_v56, %v152_v50  ;;  %v416_v59 = vpack.c.bf16 %v227_v57, %v225_v51 }
  0xe9   :  { %351 = vst [vmem:[#allocation2 + $0x30] sm:$0xff] %v415_v58  ;;  %352 = vst [vmem:[#allocation2 + $0x38] sm:$0xff] %v416_v59  ;;  %v157_v60 = vpop.f32.mrb[8].mxu0  ;;  %v230_v61 = vpop.f32.mrb[8].mxu1 }
  0xea   :  { %v158_v62 = vadd.f32 %v157_v60, %v522_v16  ;;  %v231_v63 = vadd.f32 %v230_v61, %v524_v17  ;;  %v159_v0 = vpop.f32.mrb[9].mxu0  ;;  %v232_v1 = vpop.f32.mrb[9].mxu1 }
  0xeb   :  { %v160_v2 = vadd.f32 %v159_v0, %v526_v18  ;;  %v233_v3 = vadd.f32 %v232_v1, %v528_v19  ;;  %v161_v4 = vpop.f32.mrb[10].mxu0  ;;  %v234_v5 = vpop.f32.mrb[10].mxu1 }
  0xec   :  { %v162_v6 = vadd.f32 %v161_v4, %v522_v16  ;;  %v235_v7 = vadd.f32 %v234_v5, %v524_v17  ;;  %v163_v8 = vpop.f32.mrb[11].mxu0  ;;  %v236_v9 = vpop.f32.mrb[11].mxu1 }
  0xed   :  { %v417_v10 = vpack.c.bf16 %v160_v2, %v158_v62  ;;  %v418_v11 = vpack.c.bf16 %v233_v3, %v231_v63  ;;  %v164_v12 = vadd.f32 %v163_v8, %v526_v18  ;;  %v237_v13 = vadd.f32 %v236_v9, %v528_v19 }
  0xef   :  { %353 = vst [vmem:[#allocation2 + $0x40] sm:$0xff] %v417_v10  ;;  %354 = vst [vmem:[#allocation2 + $0x48] sm:$0xff] %v418_v11  ;;  %v419_v14 = vpack.c.bf16 %v164_v12, %v162_v6  ;;  %v420_v15 = vpack.c.bf16 %v237_v13, %v235_v7 }
  0xf1   :  { %355 = vst [vmem:[#allocation2 + $0x50] sm:$0xff] %v419_v14  ;;  %356 = vst [vmem:[#allocation2 + $0x58] sm:$0xff] %v420_v15  ;;  %v167_v20 = vpop.f32.mrb[12].mxu0  ;;  %v240_v21 = vpop.f32.mrb[12].mxu1 }
  0xf2   :  { %v168_v22 = vadd.f32 %v167_v20, %v522_v16  ;;  %v241_v23 = vadd.f32 %v240_v21, %v524_v17  ;;  %v169_v24 = vpop.f32.mrb[13].mxu0  ;;  %v242_v25 = vpop.f32.mrb[13].mxu1 }
  0xf3   :  { %v170_v26 = vadd.f32 %v169_v24, %v526_v18  ;;  %v243_v27 = vadd.f32 %v242_v25, %v528_v19  ;;  %v171_v28 = vpop.f32.mrb[14].mxu0  ;;  %v244_v29 = vpop.f32.mrb[14].mxu1 }
  0xf4   :  { %v172_v30 = vadd.f32 %v171_v28, %v522_v16  ;;  %v245_v31 = vadd.f32 %v244_v29, %v524_v17  ;;  %v173_v32 = vpop.f32.mrb[15].mxu0  ;;  %v246_v33 = vpop.f32.mrb[15].mxu1 }
  0xf5   :  { %v421_v34 = vpack.c.bf16 %v170_v26, %v168_v22  ;;  %v422_v35 = vpack.c.bf16 %v243_v27, %v241_v23  ;;  %v174_v36 = vadd.f32 %v173_v32, %v526_v18  ;;  %v247_v37 = vadd.f32 %v246_v33, %v528_v19 }
  0xf7   :  { %357 = vst [vmem:[#allocation2 + $0x60] sm:$0xff] %v421_v34  ;;  %358 = vst [vmem:[#allocation2 + $0x68] sm:$0xff] %v422_v35  ;;  %v423_v38 = vpack.c.bf16 %v174_v36, %v172_v30  ;;  %v424_v39 = vpack.c.bf16 %v247_v37, %v245_v31 }
  0xf9   :  { %359 = vst [vmem:[#allocation2 + $0x70] sm:$0xff] %v423_v38  ;;  %360 = vst [vmem:[#allocation2 + $0x78] sm:$0xff] %v424_v39 }
  0xfa   :  { %450 = shalt.err (!%p447_p4)
}
  0xfb   :  { %s451_s5 = scalar_lea.hbm %s577_s3, 2048 }
  0xfc   :  { %p452_p5 = scmp.ne.s32.totalorder %s577_s3, %s451_s5  ;;  %p455_p6 = scmp.lt.u32.totalorder %s451_s5, %s577_s3 }
  0xfe   :  { %p457_p7 = pnand %p455_p6, %p452_p5 }
 0x100   :  { %460 = shalt.err (!%p457_p7)
}
 0x101   :  { %s465_s10 = smov 256   ;;  %s466_s11 = smov 16  }
 0x102   :  { %372 = dma.vmem_to_hbm [thread:$0]  %s367_s2, 2048, %s577_s3, [#allocation3], %s465_s10, %s465_s10, %s466_s11  }
 0x103   :  { %461 = dma.done.wait [#allocation3], 2048  }
 0x104   :  { %462 = vsyncadd [#allocation3], 4294965248 }
 0x105   :  { %376 = vsyncpa [#allocation3], 1 }

</bundles_post_ra>
